<compile_context>
chip_gen: v5e
topology: v5e:2x2
jax: 0.10.0
libtpu: 0.0.40
codegen_flags: <defaults>
</compile_context>

<pallas_src>
import jax
import jax.numpy as jnp
import numpy as np
from jax.experimental import pallas as pl
from jax.experimental.pallas import tpu as pltpu


def _cs_se_kernel(x_ref, w1t_ref, b1_ref, w2_ref, b2_ref, ws_ref, bs_ref, o_ref):
    x = x_ref[...]                                   # (bt, C, HW), input dtype
    xf = x.astype(jnp.float32)

    # ---- cSE: squeeze = mean over HW, then two tiny FCs (VPU/XLU only) ----
    sq = jnp.mean(xf, axis=2, keepdims=True)                              # (bt, C, 1)
    # h[b, r] = sum_c sq[b, c] * W1[r, c] + b1[r]
    h = jnp.sum(sq * w1t_ref[...][None, :, :], axis=1, keepdims=True)     # (bt, 1, Cr)
    h = h + b1_ref[...][None, :, :]
    h = h * jax.nn.sigmoid(h)                                             # SiLU
    # s[b, c] = sum_r h[b, r] * W2[c, r] + b2[c]
    s = jnp.sum(h * w2_ref[...][None, :, :], axis=2, keepdims=True)       # (bt, C, 1)
    gate_c = jax.nn.sigmoid(s + b2_ref[...][None, :, :])                  # (bt, C, 1)

    # ---- sSE: 1x1 conv C->1 = broadcast-multiply + sublane reduce over C ----
    sp = jnp.sum(xf * ws_ref[...][None, :, :], axis=1, keepdims=True)     # (bt, 1, HW)
    gate_s = jax.nn.sigmoid(sp + bs_ref[0, 0])                            # (bt, 1, HW)

    # ---- concurrent SE: elementwise max of the two excitations ----
    gc = gate_c.astype(x.dtype)
    gs = gate_s.astype(x.dtype)
    o_ref[...] = jnp.maximum(x * gc, x * gs).astype(o_ref.dtype)


def _pick_block_batch(B, C, HW):
    """Largest divisor of B whose per-step f32 working block fits the VMEM budget."""
    c_pad = -(-C // 8) * 8
    hw_pad = -(-HW // 128) * 128
    per_batch = c_pad * hw_pad * 4          # f32 working copy dominates
    budget = 4 * 1024 * 1024                # conservative across v5e / v6e / v7x
    bt = 1
    for cand in range(1, B + 1):
        if B % cand == 0 and cand * per_batch <= budget:
            bt = cand
    return bt


@jax.jit
def channel_spatial_se(x, w1, b1, w2, b2, ws, bs):
    """x: (B, C, H, W); w1: (Cr, C); b1: (Cr,); w2: (C, Cr); b2: (C,);
    ws: (C,) (squeezed 1x1 conv weight); bs: () (conv bias)."""
    B, C, H, W = x.shape
    Cr = w1.shape[0]
    HW = H * W
    x2 = x.reshape(B, C, HW)                         # zero-copy

    bt = _pick_block_batch(B, C, HW)
    grid = (B // bt,)

    f32 = jnp.float32
    w1t = w1.T.astype(f32)                           # (C, Cr)  pre-transposed
    b1r = b1.reshape(1, Cr).astype(f32)              # lane-major
    w2f = w2.astype(f32)                             # (C, Cr)  natural orientation
    b2c = b2.reshape(C, 1).astype(f32)               # sublane-major
    wsc = ws.reshape(C, 1).astype(f32)               # sublane-major column
    bss = bs.reshape(1, 1).astype(f32)               # pure scalar -> SMEM

    out = pl.pallas_call(
        _cs_se_kernel,
        out_shape=jax.ShapeDtypeStruct((B, C, HW), x.dtype),
        grid=grid,
        in_specs=[
            pl.BlockSpec((bt, C, HW), lambda i: (i, 0, 0)),   # x slab (bt images)
            pl.BlockSpec((C, Cr), lambda i: (0, 0)),          # fc1 weight^T
            pl.BlockSpec((1, Cr), lambda i: (0, 0)),          # fc1 bias
            pl.BlockSpec((C, Cr), lambda i: (0, 0)),          # fc2 weight
            pl.BlockSpec((C, 1), lambda i: (0, 0)),           # fc2 bias
            pl.BlockSpec((C, 1), lambda i: (0, 0)),           # 1x1 conv weight
            pl.BlockSpec(memory_space=pltpu.MemorySpace.SMEM),  # conv bias scalar
        ],
        out_specs=pl.BlockSpec((bt, C, HW), lambda i: (i, 0, 0)),
        compiler_params=pltpu.CompilerParams(
            dimension_semantics=("parallel",)),
    )(x2, w1t, b1r, w2f, b2c, wsc, bss)
    return out.reshape(B, C, H, W)


def _reference(x, w1, b1, w2, b2, ws, bs):
    """Pure-JAX reimplementation of the PyTorch forward (NCHW)."""
    B, C, H, W = x.shape
    xf = x.astype(jnp.float32)
    # cSE
    sq = xf.reshape(B, C, -1).mean(axis=2)                    # (B, C)
    h = sq @ w1.T + b1                                        # (B, Cr)
    h = h * jax.nn.sigmoid(h)                                 # SiLU
    gc = jax.nn.sigmoid(h @ w2.T + b2)                        # (B, C)
    cse = xf * gc[:, :, None, None]
    # sSE
    sp = jnp.einsum("bchw,c->bhw", xf, ws) + bs               # (B, H, W)
    gs = jax.nn.sigmoid(sp)[:, None, :, :]
    sse = xf * gs
    return jnp.maximum(cse, sse).astype(x.dtype)


if __name__ == "__main__":
    B, C, H, W = 2, 4, 16, 16
    reduction = 2
    Cr = C // reduction

    key = jax.random.PRNGKey(0)
    kx, k1, k2, k3, k4, k5, k6 = jax.random.split(key, 7)

    x = jax.random.normal(kx, (B, C, H, W), dtype=jnp.float32)

    # Deterministic synthetic parameters (shapes match the nn.Module __init__).
    w1 = 0.5 * jax.random.normal(k1, (Cr, C), dtype=jnp.float32)   # fc1.weight
    b1 = 0.1 * jax.random.normal(k2, (Cr,), dtype=jnp.float32)     # fc1.bias
    w2 = 0.5 * jax.random.normal(k3, (C, Cr), dtype=jnp.float32)   # fc2.weight
    b2 = 0.1 * jax.random.normal(k4, (C,), dtype=jnp.float32)      # fc2.bias
    ws = 0.5 * jax.random.normal(k5, (C,), dtype=jnp.float32)      # conv.weight (1,C,1,1) squeezed
    bs = 0.1 * jax.random.normal(k6, (), dtype=jnp.float32)        # conv.bias

    out = jax.block_until_ready(channel_spatial_se(x, w1, b1, w2, b2, ws, bs))

    ref = _reference(x, w1, b1, w2, b2, ws, bs)
    np.testing.assert_allclose(np.asarray(out), np.asarray(ref),
                               rtol=1e-5, atol=1e-5)
    print("KERNEL_OK")
</pallas_src>

<mosaic_0001>
module attributes {stable_mosaic.version = 11 : i64} {
  func.func @_cs_se_kernel(%arg0: i32, %arg1: memref<2x4x256xf32, #tpu.memory_space<vmem>>, %arg2: memref<4x2xf32, #tpu.memory_space<vmem>>, %arg3: memref<1x2xf32, #tpu.memory_space<vmem>>, %arg4: memref<4x2xf32, #tpu.memory_space<vmem>>, %arg5: memref<4x1xf32, #tpu.memory_space<vmem>>, %arg6: memref<4x1xf32, #tpu.memory_space<vmem>>, %arg7: memref<1x1xf32, #tpu.memory_space<smem>>, %arg8: memref<2x4x256xf32, #tpu.memory_space<vmem>>) attributes {dimension_semantics = [#tpu.dimension_semantics<parallel>], iteration_bounds = array<i64: 1>, scalar_prefetch = 0 : i64, scratch_operands = 0 : i64, tpu.core_type = #tpu.core_type<tc>, window_params = [{transform_indices = @transform_0, window_bounds = array<i64: 2, 4, 256>}, {pipeline_mode = #tpu.pipeline_mode<synchronous>, transform_indices = @transform_1, window_bounds = array<i64: 4, 2>}, {pipeline_mode = #tpu.pipeline_mode<synchronous>, transform_indices = @transform_2, window_bounds = array<i64: 1, 2>}, {pipeline_mode = #tpu.pipeline_mode<synchronous>, transform_indices = @transform_3, window_bounds = array<i64: 4, 2>}, {pipeline_mode = #tpu.pipeline_mode<synchronous>, transform_indices = @transform_4, window_bounds = array<i64: 4, 1>}, {pipeline_mode = #tpu.pipeline_mode<synchronous>, transform_indices = @transform_5, window_bounds = array<i64: 4, 1>}, {transform_indices = @transform_6, window_bounds = array<i64: 1, 1>}, {transform_indices = @transform_7, window_bounds = array<i64: 2, 4, 256>}]} {
    %c0 = arith.constant 0 : index
    %c0_0 = arith.constant 0 : index
    %c0_1 = arith.constant 0 : index
    %0 = vector.load %arg1[%c0, %c0_0, %c0_1] : memref<2x4x256xf32, #tpu.memory_space<vmem>>, vector<2x4x256xf32>
    %cst = arith.constant dense<0.000000e+00> : vector<2x4xf32>
    %1 = vector.multi_reduction <add>, %0, %cst [2] : vector<2x4x256xf32> to vector<2x4xf32>
    %2 = vector.shape_cast %1 : vector<2x4xf32> to vector<2x4x1xf32>
    %cst_2 = arith.constant 2.560000e+02 : f32
    %3 = vector.broadcast %cst_2 : f32 to vector<2x4x1xf32>
    %4 = arith.divf %2, %3 : vector<2x4x1xf32>
    %c0_3 = arith.constant 0 : index
    %c0_4 = arith.constant 0 : index
    %5 = vector.load %arg2[%c0_3, %c0_4] : memref<4x2xf32, #tpu.memory_space<vmem>>, vector<4x2xf32>
    %6 = vector.shape_cast %5 : vector<4x2xf32> to vector<1x4x2xf32>
    %7 = vector.broadcast %4 : vector<2x4x1xf32> to vector<2x4x2xf32>
    %8 = vector.broadcast %6 : vector<1x4x2xf32> to vector<2x4x2xf32>
    %9 = arith.mulf %7, %8 : vector<2x4x2xf32>
    %cst_5 = arith.constant dense<0.000000e+00> : vector<2x2xf32>
    %10 = vector.multi_reduction <add>, %9, %cst_5 [1] : vector<2x4x2xf32> to vector<2x2xf32>
    %11 = vector.shape_cast %10 : vector<2x2xf32> to vector<2x1x2xf32>
    %c0_6 = arith.constant 0 : index
    %c0_7 = arith.constant 0 : index
    %12 = vector.load %arg3[%c0_6, %c0_7] : memref<1x2xf32, #tpu.memory_space<vmem>>, vector<1x2xf32>
    %13 = vector.shape_cast %12 : vector<1x2xf32> to vector<1x1x2xf32>
    %14 = vector.broadcast %13 : vector<1x1x2xf32> to vector<2x1x2xf32>
    %15 = arith.addf %11, %14 : vector<2x1x2xf32>
    %16 = arith.negf %15 : vector<2x1x2xf32>
    %17 = math.exp %16 : vector<2x1x2xf32>
    %cst_8 = arith.constant 1.000000e+00 : f32
    %18 = vector.broadcast %cst_8 : f32 to vector<2x1x2xf32>
    %19 = arith.addf %18, %17 : vector<2x1x2xf32>
    %20 = arith.divf %18, %19 : vector<2x1x2xf32>
    %21 = arith.mulf %15, %20 : vector<2x1x2xf32>
    %c0_9 = arith.constant 0 : index
    %c0_10 = arith.constant 0 : index
    %22 = vector.load %arg4[%c0_9, %c0_10] : memref<4x2xf32, #tpu.memory_space<vmem>>, vector<4x2xf32>
    %23 = vector.shape_cast %22 : vector<4x2xf32> to vector<1x4x2xf32>
    %24 = vector.broadcast %21 : vector<2x1x2xf32> to vector<2x4x2xf32>
    %25 = vector.broadcast %23 : vector<1x4x2xf32> to vector<2x4x2xf32>
    %26 = arith.mulf %24, %25 : vector<2x4x2xf32>
    %cst_11 = arith.constant dense<0.000000e+00> : vector<2x4xf32>
    %27 = vector.multi_reduction <add>, %26, %cst_11 [2] : vector<2x4x2xf32> to vector<2x4xf32>
    %28 = vector.shape_cast %27 : vector<2x4xf32> to vector<2x4x1xf32>
    %c0_12 = arith.constant 0 : index
    %c0_13 = arith.constant 0 : index
    %29 = vector.load %arg5[%c0_12, %c0_13] : memref<4x1xf32, #tpu.memory_space<vmem>>, vector<4x1xf32>
    %30 = vector.shape_cast %29 : vector<4x1xf32> to vector<1x4x1xf32>
    %31 = vector.broadcast %30 : vector<1x4x1xf32> to vector<2x4x1xf32>
    %32 = arith.addf %28, %31 : vector<2x4x1xf32>
    %33 = arith.negf %32 : vector<2x4x1xf32>
    %34 = math.exp %33 : vector<2x4x1xf32>
    %cst_14 = arith.constant 1.000000e+00 : f32
    %35 = vector.broadcast %cst_14 : f32 to vector<2x4x1xf32>
    %36 = arith.addf %35, %34 : vector<2x4x1xf32>
    %37 = arith.divf %35, %36 : vector<2x4x1xf32>
    %c0_15 = arith.constant 0 : index
    %c0_16 = arith.constant 0 : index
    %38 = vector.load %arg6[%c0_15, %c0_16] : memref<4x1xf32, #tpu.memory_space<vmem>>, vector<4x1xf32>
    %39 = vector.shape_cast %38 : vector<4x1xf32> to vector<1x4x1xf32>
    %40 = vector.broadcast %39 : vector<1x4x1xf32> to vector<2x4x256xf32>
    %41 = arith.mulf %0, %40 : vector<2x4x256xf32>
    %cst_17 = arith.constant dense<0.000000e+00> : vector<2x256xf32>
    %42 = vector.multi_reduction <add>, %41, %cst_17 [1] : vector<2x4x256xf32> to vector<2x256xf32>
    %43 = vector.shape_cast %42 : vector<2x256xf32> to vector<2x1x256xf32>
    %c0_18 = arith.constant 0 : index
    %c0_19 = arith.constant 0 : index
    %44 = memref.load %arg7[%c0_18, %c0_19] : memref<1x1xf32, #tpu.memory_space<smem>>
    %45 = vector.broadcast %44 : f32 to vector<2x1x256xf32>
    %46 = arith.addf %43, %45 : vector<2x1x256xf32>
    %47 = arith.negf %46 : vector<2x1x256xf32>
    %48 = math.exp %47 : vector<2x1x256xf32>
    %cst_20 = arith.constant 1.000000e+00 : f32
    %49 = vector.broadcast %cst_20 : f32 to vector<2x1x256xf32>
    %50 = arith.addf %49, %48 : vector<2x1x256xf32>
    %51 = arith.divf %49, %50 : vector<2x1x256xf32>
    %52 = vector.broadcast %37 : vector<2x4x1xf32> to vector<2x4x256xf32>
    %53 = arith.mulf %0, %52 : vector<2x4x256xf32>
    %54 = vector.broadcast %51 : vector<2x1x256xf32> to vector<2x4x256xf32>
    %55 = arith.mulf %0, %54 : vector<2x4x256xf32>
    %56 = arith.maximumf %53, %55 : vector<2x4x256xf32>
    %c0_21 = arith.constant 0 : index
    %c0_22 = arith.constant 0 : index
    %c0_23 = arith.constant 0 : index
    %57 = vector.load %arg8[%c0_21, %c0_22, %c0_23] : memref<2x4x256xf32, #tpu.memory_space<vmem>>, vector<2x4x256xf32>
    tpu.vector_store %arg8[%c0_21, %c0_22, %c0_23], %56 {strides = array<i32>} : memref<2x4x256xf32, #tpu.memory_space<vmem>>, vector<2x4x256xf32>,
    return
  }
  func.func @transform_0(%arg0: i32) -> (i32, i32, i32) {
    %c0_i32 = arith.constant 0 : i32
    %c0_i32_0 = arith.constant 0 : i32
    %c0_i32_1 = arith.constant 0 : i32
    return %arg0, %c0_i32, %c0_i32_0 : i32, i32, i32
  }
  func.func @transform_1(%arg0: i32) -> (i32, i32) {
    %c0_i32 = arith.constant 0 : i32
    %c0_i32_0 = arith.constant 0 : i32
    %c0_i32_1 = arith.constant 0 : i32
    return %c0_i32, %c0_i32_0 : i32, i32
  }
  func.func @transform_2(%arg0: i32) -> (i32, i32) {
    %c0_i32 = arith.constant 0 : i32
    %c0_i32_0 = arith.constant 0 : i32
    %c0_i32_1 = arith.constant 0 : i32
    return %c0_i32, %c0_i32_0 : i32, i32
  }
  func.func @transform_3(%arg0: i32) -> (i32, i32) {
    %c0_i32 = arith.constant 0 : i32
    %c0_i32_0 = arith.constant 0 : i32
    %c0_i32_1 = arith.constant 0 : i32
    return %c0_i32, %c0_i32_0 : i32, i32
  }
  func.func @transform_4(%arg0: i32) -> (i32, i32) {
    %c0_i32 = arith.constant 0 : i32
    %c0_i32_0 = arith.constant 0 : i32
    %c0_i32_1 = arith.constant 0 : i32
    return %c0_i32, %c0_i32_0 : i32, i32
  }
  func.func @transform_5(%arg0: i32) -> (i32, i32) {
    %c0_i32 = arith.constant 0 : i32
    %c0_i32_0 = arith.constant 0 : i32
    %c0_i32_1 = arith.constant 0 : i32
    return %c0_i32, %c0_i32_0 : i32, i32
  }
  func.func @transform_6(%arg0: i32) -> (i32, i32) {
    %c0_i32 = arith.constant 0 : i32
    %c0_i32_0 = arith.constant 0 : i32
    %c0_i32_1 = arith.constant 0 : i32
    return %c0_i32, %c0_i32_0 : i32, i32
  }
  func.func @transform_7(%arg0: i32) -> (i32, i32, i32) {
    %c0_i32 = arith.constant 0 : i32
    %c0_i32_0 = arith.constant 0 : i32
    %c0_i32_1 = arith.constant 0 : i32
    return %arg0, %c0_i32, %c0_i32_0 : i32, i32, i32
  }
}

</mosaic_0001>

<bundles_post_ra>
// kernel: channel_spatial_se.1
= control target key start
LH: loop header
LB: loop body
LE: loop exit
PB: predicated region body
PF: predicated region fallthrough
CT: control target
= control target key end

     0   :  { %vm42_vm0 = vcmask 1043456   ;;  %v397_v12 = vmov 256.0   ;;  %vm65_vm2 = vcmask 11264   ;;  %v398_v48 = vmov 0   ;;  %s501_s0 = inlined_call_operand.vmem [shape: f32[2,4,256], index: 0, kind: input, shape index: {}]   ;;  %s502_s1 = inlined_call_operand.vmem [shape: f32[4,2], index: 1, kind: input, shape index: {}]   ;;  %s503_s2 = inlined_call_operand.vmem [shape: f32[1,2], index: 2, kind: input, shape index: {}]   ;;  %s504_s5 = inlined_call_operand.vmem [shape: f32[4,1], index: 5, kind: input, shape index: {}]   ;;  %s505_s3 = inlined_call_operand.vmem [shape: f32[4,2], index: 3, kind: input, shape index: {}]   ;;  %s506_s4 = inlined_call_operand.vmem [shape: f32[4,1], index: 4, kind: input, shape index: {}]   ;;  %s507_s6 = inlined_call_operand.<no memory space> [shape: f32[1,1], index: 6, kind: input, shape index: {}]   ;;  %s508_s7 = inlined_call_operand.vmem [shape: f32[2,4,256], index: 7, kind: output, shape index: {}]  }
   0x1   :  { %v443_v0 = vld [vmem:[%s501_s0] sm:$0xff]  ;;  %v448_v1 = vld [vmem:[%s501_s0 + $0x8] sm:$0xff]  ;;  %363 = vrcp.f32 %v397_v12  ;;  %361 = vset.pattern.permute.xlu2 %v398_v48  ;;  %362 = vset.pattern.permute.xlu0 %v398_v48 }
   0x2   :  { %31 = vst [vmem:[#allocation1] ss:$2 sm:$0xff] %v443_v0  ;;  %v62_v19 = vld [vmem:[%s502_s1] sm:$0xf] }
   0x3   :  { %35 = vst [vmem:[#allocation1 + $0x10] ss:$2 sm:$0xff] %v448_v1  ;;  %v80_v34 = vld [vmem:[%s503_s2] sm:$0x1] }
   0x4   :  { %v175_v47 = vld [vmem:[%s504_s5] sm:$0xf] }
   0x5   :  { %178 = vperm.xlu2 %361, %v175_v47  }
   0x7   :  { %v364_v13 = vpop.eup %363 }
   0x8   :  { %v54_v14 = vmul.f32 256.0, %v364_v13  ;;  %vm58_vm1 = vweird.f32 %v364_v13 }
   0x9   :  { %v32_v2 = vld.sshfl [vmem:[#allocation1] sm:$0xff pattern:$0x75316420]  ;;  %v33_v3 = vld.sshfl [vmem:[#allocation1 + $0x8] sm:$0xff pattern:$0x75316420] }
   0xa   :  { %v43_v4 = vsel %vm42_vm0, %v32_v2, 0.0  ;;  %v44_v5 = vsel %vm42_vm0, %v33_v3, 0.0  ;;  %v36_v7 = vld.sshfl [vmem:[#allocation1 + $0x10] sm:$0xff pattern:$0x75316420]  ;;  %v55_v15 = vsub.f32 1.0, %v54_v14 }
   0xb   :  { %v45_v6 = vadd.f32 %v44_v5, %v43_v4  ;;  %v37_v8 = vld.sshfl [vmem:[#allocation1 + $0x18] sm:$0xff pattern:$0x75316420]  ;;  %v48_v9 = vsel %vm42_vm0, %v36_v7, 0.0  ;;  %v123_v3 = vld [vmem:[%s505_s3] sm:$0xf] }
   0xc   :  { %v49_v10 = vsel %vm42_vm0, %v37_v8, 0.0  ;;  %v56_v16 = vmul.f32 %v364_v13, %v55_v15 }
   0xd   :  { %46 = vadd.xlane.f32.xlu0 %v45_v6  ;;  %v50_v11 = vadd.f32 %v49_v10, %v48_v9 }
   0xe   :  { %v57_v17 = vadd.f32 %v364_v13, %v56_v16 }
  0x10   :  { %v59_v18 = vsel %vm58_vm1, %v364_v13, %v57_v17 }
  0x15   :  { %51 = vadd.xlane.f32.xlu0 %v50_v11 }
  0x80   :  { %v47_v20 = vpop.xlane.xlu0 %46 }
  0x81   :  { %v60_v21 = vmul.f32 %v59_v18, %v47_v20 }
  0x83   :  { %v63_v22 = vmul.f32 %v62_v19, %v60_v21 }
  0x85   :  { %v66_v23 = vsel %vm65_vm2, %v63_v22, 0.0 }
  0x86   :  { %v67_v24 = vrot.slane %v66_v23, 4 }
  0x88   :  { %v52_v25 = vpop.xlane.xlu0 %51  ;;  %v68_v26 = vadd.f32 %v67_v24, %v66_v23  ;;  %v399_v23 = vmov 839922192  }
  0x89   :  { %v61_v27 = vmul.f32 %v59_v18, %v52_v25  ;;  %v134_v18 = vld [vmem:[%s506_s4] sm:$0xf]  ;;  %v181_v24 = vunpack.c.l.s4 %v399_v23 }
  0x8a   :  { %v69_v28 = vrot.slane %v68_v26, 2 }
  0x8b   :  { %v64_v29 = vmul.f32 %v62_v19, %v61_v27  ;;  %v475_v27 = vunpack.c.0.s8 %v181_v24 }
  0x8c   :  { %v70_v30 = vadd.f32 %v69_v28, %v68_v26  ;;  %v179_v26 = vpop.permute.xlu2 %178 }
  0x8d   :  { %v73_v31 = vsel %vm65_vm2, %v64_v29, 0.0 }
  0x8e   :  { %v71_v32 = vrot.slane %v70_v30, 1  ;;  %v74_v33 = vrot.slane %v73_v31, 4 }
  0x90   :  { %v72_v35 = vadd.f32 %v71_v32, %v70_v30  ;;  %v75_v36 = vadd.f32 %v74_v33, %v73_v31  ;;  %v183_v31 = vperm.slane %v179_v26, %v475_v27 }
  0x92   :  { %v81_v37 = vadd.f32 %v80_v34, %v72_v35  ;;  %v76_v38 = vrot.slane %v75_v36, 2  ;;  %v185_v32 = vmul.f32 %v183_v31, %v443_v0  ;;  %v186_v33 = vmul.f32 %v183_v31, %v448_v1 }
  0x94   :  { %v350_v39 = vmul.f32 -1.442695, %v81_v37  ;;  %v77_v40 = vadd.f32 %v76_v38, %v75_v36  ;;  %189 = vst [vmem:[#allocation1] ss:$2 sm:$0xff] %v185_v32 }
  0x95   :  { %193 = vst [vmem:[#allocation1 + $0x10] ss:$2 sm:$0xff] %v186_v33 }
  0x96   :  { %365 = vpow2.f32 %v350_v39  ;;  %v78_v41 = vrot.slane %v77_v40, 1 }
  0x98   :  { %v79_v42 = vadd.f32 %v78_v41, %v77_v40 }
  0x9a   :  { %v82_v43 = vadd.f32 %v80_v34, %v79_v42 }
  0x9c   :  { %v366_v44 = vpop.eup %365  ;;  %v351_v45 = vmul.f32 -1.442695, %v82_v43 }
  0x9d   :  { %v89_v46 = vadd.f32 1.0, %v366_v44 }
  0x9e   :  { %367 = vpow2.f32 %v351_v45 }
  0x9f   :  { %369 = vrcp.f32 %v89_v46  ;;  %v102_v54 = vand.u32 2147483648, %v89_v46  ;;  %v100_v56 = vand.u32 2147483647, %v89_v46  ;;  %vm96_vm4 = vweird.f32 %v89_v46 }
  0xa1   :  { %v103_v59 = vor.u32 1.1754944e-38, %v102_v54  ;;  %vm101_vm6 = vcmp.eq.f32.partialorder %v100_v56, 8.507059e+37 }
  0xa4   :  { %v368_v49 = vpop.eup %367 }
  0xa5   :  { %v370_v50 = vpop.eup %369  ;;  %v90_v51 = vadd.f32 1.0, %v368_v49 }
  0xa6   :  { %v92_v52 = vmul.f32 %v370_v50, %v89_v46  ;;  %vm97_vm3 = vweird.f32 %v370_v50 }
  0xa7   :  { %371 = vrcp.f32 %v90_v51  ;;  %vm98_vm5 = vmor %vm96_vm4, %vm97_vm3  ;;  %v117_v4 = vand.u32 2147483648, %v90_v51  ;;  %v115_v7 = vand.u32 2147483647, %v90_v51  ;;  %vm111_vm8 = vweird.f32 %v90_v51 }
  0xa8   :  { %v93_v53 = vsub.f32 1.0, %v92_v52  ;;  %v191_v52 = vld.sshfl [vmem:[#allocation1 + $0x8] sm:$0xff pattern:$0x75316420] }
  0xa9   :  { %v118_v10 = vor.u32 1.1754944e-38, %v117_v4  ;;  %vm116_vm10 = vcmp.eq.f32.partialorder %v115_v7, 8.507059e+37 }
  0xaa   :  { %v94_v55 = vmul.f32 %v370_v50, %v93_v53 }
  0xac   :  { %v95_v57 = vadd.f32 %v370_v50, %v94_v55  ;;  %v207_v55 = vsel %vm42_vm0, %v191_v52, 0.0 }
  0xad   :  { %v372_v58 = vpop.eup %371 }
  0xae   :  { %v99_v60 = vsel %vm98_vm5, %v370_v50, %v95_v57  ;;  %v107_v61 = vmul.f32 %v372_v58, %v90_v51  ;;  %vm112_vm7 = vweird.f32 %v372_v58  ;;  %v190_v57 = vld.sshfl [vmem:[#allocation1] sm:$0xff pattern:$0x75316420] }
  0xaf   :  { %v104_v62 = vsel %vm101_vm6, %v103_v59, %v99_v60  ;;  %vm113_vm9 = vmor %vm111_vm8, %vm112_vm7  ;;  %v208_v59 = vrot.slane %v207_v55, 4  ;;  %v200_v60 = vsel %vm42_vm0, %v190_v57, 0.0 }
  0xb0   :  { %v121_v63 = vmul.f32 %v104_v62, %v81_v37  ;;  %v108_v2 = vsub.f32 1.0, %v107_v61  ;;  %v201_v61 = vrot.slane %v200_v60, 4 }
  0xb1   :  { %v209_v62 = vadd.f32 %v208_v59, %v207_v55 }
  0xb2   :  { %v124_v5 = vperm.slane %v121_v63, 0  ;;  %v109_v6 = vmul.f32 %v372_v58, %v108_v2  ;;  %v202_v63 = vadd.f32 %v201_v61, %v200_v60 }
  0xb3   :  { %v210_v2 = vrot.slane %v209_v62, 2 }
  0xb4   :  { %v126_v8 = vmul.f32 %v124_v5, %v123_v3  ;;  %v110_v9 = vadd.f32 %v372_v58, %v109_v6 }
  0xb5   :  { %v211_v4 = vadd.f32 %v210_v2, %v209_v62 }
  0xb6   :  { %v128_v11 = vsel %vm65_vm2, %v126_v8, 0.0  ;;  %v114_v12 = vsel %vm113_vm9, %v372_v58, %v110_v9  ;;  %v229_v9 = vstv %s507_s6 }
  0xb7   :  { %129 = vadd.xlane.f32.xlu1 %v128_v11  ;;  %v119_v13 = vsel %vm116_vm10, %v118_v10, %v114_v12  ;;  %v212_v6 = vrot.slane %v211_v4, 1 }
  0xb8   :  { %v122_v14 = vmul.f32 %v119_v13, %v82_v43 }
  0xb9   :  { %v213_v8 = vadd.f32 %v212_v6, %v211_v4 }
  0xba   :  { %v125_v15 = vperm.slane %v122_v14, 0  ;;  %v195_v14 = vld.sshfl [vmem:[#allocation1 + $0x18] sm:$0xff pattern:$0x75316420] }
  0xbb   :  { %v231_v11 = vadd.f32 %v229_v9, %v213_v8 }
  0xbc   :  { %v127_v16 = vmul.f32 %v125_v15, %v123_v3  ;;  %v203_v3 = vrot.slane %v202_v63, 2  ;;  %v221_v15 = vsel %vm42_vm0, %v195_v14, 0.0 }
  0xbd   :  { %v355_v13 = vmul.f32 -1.442695, %v231_v11 }
  0xbe   :  { %v131_v17 = vsel %vm65_vm2, %v127_v16, 0.0  ;;  %v204_v5 = vadd.f32 %v203_v3, %v202_v63 }
  0xbf   :  { %132 = vadd.xlane.f32.xlu1 %v131_v17  ;;  %v194_v17 = vld.sshfl [vmem:[#allocation1 + $0x10] sm:$0xff pattern:$0x75316420] }
  0xc0   :  { %v205_v7 = vrot.slane %v204_v5, 1 }
  0xc2   :  { %v206_v10 = vadd.f32 %v205_v7, %v204_v5 }
  0xc4   :  { %v230_v12 = vadd.f32 %v229_v9, %v206_v10 }
  0xc6   :  { %v354_v16 = vmul.f32 -1.442695, %v230_v12 }
 0x12a   :  { %v130_v19 = vpop.xlane.xlu1 %129 }
 0x12b   :  { %v135_v20 = vadd.f32 %v134_v18, %v130_v19  ;;  %v214_v19 = vsel %vm42_vm0, %v194_v17, 0.0 }
 0x12d   :  { %v352_v21 = vmul.f32 -1.442695, %v135_v20 }
 0x12f   :  { %373 = vpow2.f32 %v352_v21  ;;  %v215_v21 = vrot.slane %v214_v19, 4 }
 0x132   :  { %v133_v22 = vpop.xlane.xlu1 %132 }
 0x133   :  { %v136_v25 = vadd.f32 %v134_v18, %v133_v22  ;;  %v222_v18 = vrot.slane %v221_v15, 4 }
 0x135   :  { %v374_v28 = vpop.eup %373  ;;  %v353_v29 = vmul.f32 -1.442695, %v136_v25  ;;  %v223_v22 = vadd.f32 %v222_v18, %v221_v15  ;;  %v216_v25 = vadd.f32 %v215_v21, %v214_v19 }
 0x136   :  { %v143_v30 = vadd.f32 1.0, %v374_v28 }
 0x137   :  { %375 = vpow2.f32 %v353_v29  ;;  %v224_v26 = vrot.slane %v223_v22, 2  ;;  %v217_v29 = vrot.slane %v216_v25, 2 }
 0x138   :  { %377 = vrcp.f32 %v143_v30  ;;  %v156_v39 = vand.u32 2147483648, %v143_v30  ;;  %v154_v41 = vand.u32 2147483647, %v143_v30  ;;  %vm150_vm12 = vweird.f32 %v143_v30 }
 0x139   :  { %v218_v31 = vadd.f32 %v217_v29, %v216_v25 }
 0x13a   :  { %v157_v44 = vor.u32 1.1754944e-38, %v156_v39  ;;  %vm155_vm14 = vcmp.eq.f32.partialorder %v154_v41, 8.507059e+37 }
 0x13d   :  { %v376_v34 = vpop.eup %375 }
 0x13e   :  { %v378_v35 = vpop.eup %377  ;;  %v144_v36 = vadd.f32 1.0, %v376_v34 }
 0x13f   :  { %v146_v37 = vmul.f32 %v378_v35, %v143_v30  ;;  %vm151_vm11 = vweird.f32 %v378_v35  ;;  %v225_v30 = vadd.f32 %v224_v26, %v223_v22 }
 0x140   :  { %379 = vrcp.f32 %v144_v36  ;;  %vm152_vm13 = vmor %vm150_vm12, %vm151_vm11  ;;  %v171_v49 = vand.u32 2147483648, %v144_v36  ;;  %v169_v51 = vand.u32 2147483647, %v144_v36  ;;  %vm165_vm1 = vweird.f32 %v144_v36 }
 0x141   :  { %v147_v38 = vsub.f32 1.0, %v146_v37  ;;  %381 = vpow2.f32 %v355_v13  ;;  %v226_v32 = vrot.slane %v225_v30, 1 }
 0x142   :  { %v172_v54 = vor.u32 1.1754944e-38, %v171_v49  ;;  %vm170_vm3 = vcmp.eq.f32.partialorder %v169_v51, 8.507059e+37  ;;  %383 = vpow2.f32 %v354_v16 }
 0x143   :  { %v148_v40 = vmul.f32 %v378_v35, %v147_v38 }
 0x145   :  { %v149_v42 = vadd.f32 %v378_v35, %v148_v40 }
 0x146   :  { %v380_v43 = vpop.eup %379 }
 0x147   :  { %v153_v45 = vsel %vm152_vm13, %v378_v35, %v149_v42  ;;  %v161_v46 = vmul.f32 %v380_v43, %v144_v36  ;;  %vm166_vm15 = vweird.f32 %v380_v43  ;;  %v382_v20 = vpop.eup %381  ;;  %v219_v35 = vrot.slane %v218_v31, 1 }
 0x148   :  { %v158_v47 = vsel %vm155_vm14, %v157_v44, %v153_v45  ;;  %vm167_vm2 = vmor %vm165_vm1, %vm166_vm15  ;;  %v247_v23 = vadd.f32 1.0, %v382_v20  ;;  %v384_v24 = vpop.eup %383  ;;  %v227_v36 = vadd.f32 %v226_v32, %v225_v30 }
 0x149   :  { %312 = vperm.xlu2 %361, %v158_v47   ;;  %v162_v48 = vsub.f32 1.0, %v161_v46  ;;  %v246_v28 = vadd.f32 1.0, %v384_v24  ;;  %v220_v40 = vadd.f32 %v219_v35, %v218_v31 }
 0x14a   :  { %385 = vrcp.f32 %v247_v23  ;;  %v233_v41 = vadd.f32 %v229_v9, %v227_v36  ;;  %vm270_vm4 = vweird.f32 %v247_v23  ;;  %v274_v46 = vand.u32 2147483647, %v247_v23 }
 0x14b   :  { %v163_v50 = vmul.f32 %v380_v43, %v162_v48  ;;  %387 = vrcp.f32 %v246_v28  ;;  %v232_v44 = vadd.f32 %v229_v9, %v220_v40  ;;  %v276_v47 = vand.u32 2147483648, %v247_v23 }
 0x14c   :  { %v357_v45 = vmul.f32 -1.442695, %v233_v41  ;;  %vm255_vm7 = vweird.f32 %v246_v28  ;;  %v259_v51 = vand.u32 2147483647, %v246_v28  ;;  %v261_v52 = vand.u32 2147483648, %v246_v28 }
 0x14d   :  { %v164_v53 = vadd.f32 %v380_v43, %v163_v50  ;;  %v356_v50 = vmul.f32 -1.442695, %v232_v44  ;;  %vm275_vm9 = vcmp.eq.f32.partialorder %v274_v46, 8.507059e+37 }
 0x14e   :  { %389 = vpow2.f32 %v357_v45  ;;  %v262_v57 = vor.u32 1.1754944e-38, %v261_v52  ;;  %vm260_vm11 = vcmp.eq.f32.partialorder %v259_v51, 8.507059e+37 }
 0x14f   :  { %v168_v56 = vsel %vm167_vm2, %v380_v43, %v164_v53  ;;  %v277_v53 = vor.u32 1.1754944e-38, %v276_v47  ;;  %391 = vpow2.f32 %v356_v50 }
 0x150   :  { %v173_v58 = vsel %vm170_vm3, %v172_v54, %v168_v56  ;;  %v386_v33 = vpop.eup %385 }
 0x151   :  { %316 = vperm.xlu0 %362, %v173_v58   ;;  %v266_v34 = vmul.f32 %v386_v33, %v247_v23  ;;  %v388_v37 = vpop.eup %387  ;;  %vm271_vm5 = vweird.f32 %v386_v33 }
 0x152   :  { %v251_v38 = vmul.f32 %v388_v37, %v246_v28  ;;  %vm272_vm6 = vmor %vm270_vm4, %vm271_vm5  ;;  %vm256_vm8 = vweird.f32 %v388_v37 }
 0x153   :  { %v267_v39 = vsub.f32 1.0, %v266_v34  ;;  %vm257_vm10 = vmor %vm255_vm7, %vm256_vm8 }
 0x154   :  { %v252_v42 = vsub.f32 1.0, %v251_v38  ;;  %v390_v56 = vpop.eup %389 }
 0x155   :  { %v268_v43 = vmul.f32 %v386_v33, %v267_v39  ;;  %v249_v60 = vadd.f32 1.0, %v390_v56  ;;  %v392_v61 = vpop.eup %391 }
 0x156   :  { %v253_v48 = vmul.f32 %v388_v37, %v252_v42  ;;  %v248_v2 = vadd.f32 1.0, %v392_v61 }
 0x157   :  { %v269_v49 = vadd.f32 %v386_v33, %v268_v43  ;;  %393 = vrcp.f32 %v249_v60  ;;  %vm300_vm12 = vweird.f32 %v249_v60  ;;  %v306_v16 = vand.u32 2147483648, %v249_v60 }
 0x158   :  { %v254_v54 = vadd.f32 %v388_v37, %v253_v48  ;;  %395 = vrcp.f32 %v248_v2  ;;  %v304_v19 = vand.u32 2147483647, %v249_v60  ;;  %vm285_vm15 = vweird.f32 %v248_v2 }
 0x159   :  { %v273_v55 = vsel %vm272_vm6, %v386_v33, %v269_v49  ;;  %v307_v20 = vor.u32 1.1754944e-38, %v306_v16  ;;  %v289_v22 = vand.u32 2147483647, %v248_v2 }
 0x15a   :  { %v278_v58 = vsel %vm275_vm9, %v277_v53, %v273_v55  ;;  %v258_v59 = vsel %vm257_vm10, %v388_v37, %v254_v54  ;;  %vm305_vm2 = vcmp.eq.f32.partialorder %v304_v19, 8.507059e+37 }
 0x15b   :  { %v334_v62 = vrot.slane %v278_v58, 4  ;;  %v263_v63 = vsel %vm260_vm11, %v262_v57, %v258_v59  ;;  %vm290_vm4 = vcmp.eq.f32.partialorder %v289_v22, 8.507059e+37 }
 0x15d   :  { %v336_v3 = vsel %vm42_vm0, %v263_v63, %v334_v62  ;;  %v394_v7 = vpop.eup %393 }
 0x15e   :  { %v340_v5 = vmul.f32 %v336_v3, %v443_v0  ;;  %v296_v10 = vmul.f32 %v394_v7, %v249_v60  ;;  %v396_v11 = vpop.eup %395  ;;  %vm301_vm13 = vweird.f32 %v394_v7 }
 0x15f   :  { %v281_v12 = vmul.f32 %v396_v11, %v248_v2  ;;  %vm302_vm14 = vmor %vm300_vm12, %vm301_vm13  ;;  %vm286_vm1 = vweird.f32 %v396_v11 }
 0x160   :  { %v297_v13 = vsub.f32 1.0, %v296_v10  ;;  %vm287_vm3 = vmor %vm285_vm15, %vm286_vm1 }
 0x161   :  { %v282_v14 = vsub.f32 1.0, %v281_v12 }
 0x162   :  { %v298_v15 = vmul.f32 %v394_v7, %v297_v13 }
 0x163   :  { %v283_v17 = vmul.f32 %v396_v11, %v282_v14 }
 0x164   :  { %v299_v18 = vadd.f32 %v394_v7, %v298_v15 }
 0x165   :  { %v284_v21 = vadd.f32 %v396_v11, %v283_v17 }
 0x166   :  { %v303_v23 = vsel %vm302_vm14, %v394_v7, %v299_v18 }
 0x167   :  { %v308_v25 = vsel %vm305_vm2, %v307_v20, %v303_v23  ;;  %v288_v26 = vsel %vm287_vm3, %v396_v11, %v284_v21 }
 0x168   :  { %v335_v28 = vrot.slane %v308_v25, 4 }
 0x1a3   :  { %v313_v4 = vpop.permute.xlu2 %312 }
 0x1a4   :  { %v321_v6 = vperm.slane %v313_v4, %v475_v27 }
 0x1a6   :  { %v328_v8 = vmul.f32 %v321_v6, %v443_v0  ;;  %v291_v0 = vand.u32 2147483648, %v248_v2 }
 0x1a8   :  { %v342_v9 = vmax.f32 %v328_v8, %v340_v5  ;;  %v292_v24 = vor.u32 1.1754944e-38, %v291_v0 }
 0x1aa   :  { %344 = vst [vmem:[%s508_s7] sm:$0xff] %v342_v9  ;;  %v293_v29 = vsel %vm290_vm4, %v292_v24, %v288_v26 }
 0x1ab   :  { %v337_v30 = vsel %vm42_vm0, %v293_v29, %v335_v28 }
 0x1ac   :  { %v341_v33 = vmul.f32 %v337_v30, %v448_v1 }
 0x1c3   :  { %v317_v31 = vpop.permute.xlu0 %316 }
 0x1c4   :  { %v325_v32 = vperm.slane %v317_v31, %v475_v27 }
 0x1c6   :  { %v329_v34 = vmul.f32 %v325_v32, %v448_v1 }
 0x1c8   :  { %v343_v35 = vmax.f32 %v329_v34, %v341_v33 }
 0x1ca   :  { %345 = vst [vmem:[%s508_s7 + $0x8] sm:$0xff] %v343_v35 }

</bundles_post_ra>
